<compile_context>
chip_gen: v5e
topology: v5e:2x2
jax: 0.10.0
libtpu: 0.0.40
codegen_flags: <defaults>
</compile_context>

<pallas_src>
import functools

import jax
import jax.numpy as jnp
from jax.experimental import pallas as pl
from jax.experimental.pallas import tpu as pltpu

LANE = 128
MAX_BLOCK_ROWS = 8192   # (8192, 128) f32 tile = 4 MiB; 2 inputs x 2 bufs = 16 MiB VMEM
CHUNK_ROWS = 512        # inner compute chunk: bounds live temporaries to ~2.5 MiB
NCORES = 2              # leading "parallel" axis (sharded across TCs on v7x megacore)
PAD_LOGIT = -1.0e4      # sigmoid(PAD_LOGIT) == 0 exactly in f32 -> zero contribution


def _round_up(v, m):
    return ((v + m - 1) // m) * m


def _dice_bce_kernel(x_ref, t_ref, out_ref, *, rows, steps, block_rows, chunk_rows):
    c = pl.program_id(0)
    s = pl.program_id(1)

    # The (4, 8, 128) output block is resident across the reduction axis s
    # (out index_map returns the same block for every s): init once per core.
    @pl.when(s == 0)
    def _():
        out_ref[...] = jnp.zeros_like(out_ref)

    # Unclamped global row offset of this grid step's block.  (The input index_map
    # clamps the DMA block index to stay in bounds; masking below uses the
    # unclamped offset so fully/partially out-of-range rows add exactly zero.)
    block_row0 = (c * steps + s) * block_rows

    def body(i, carry):
        r0 = pl.multiple_of(i * chunk_rows, chunk_rows)
        x = x_ref[pl.ds(r0, chunk_rows), :].astype(jnp.float32)
        t = t_ref[pl.ds(r0, chunk_rows), :].astype(jnp.float32)

        # Row-tail validity mask (computed on a cheap (chunk, 1) column, lane-broadcast).
        row_ids = block_row0 + r0 + jax.lax.broadcasted_iota(
            jnp.int32, (chunk_rows, 1), 0)
        valid = row_ids < rows
        x = jnp.where(valid, x, PAD_LOGIT)   # sigmoid -> 0, log terms -> 0 / -100
        t = jnp.where(valid, t, 0.0)

        # log(sigmoid(x)) = -softplus(-x), computed stably.
        log_p_raw = -(jnp.maximum(-x, 0.0) + jnp.log1p(jnp.exp(-jnp.abs(x))))
        p = jnp.exp(log_p_raw)                          # == sigmoid(x)
        log_p = jnp.maximum(log_p_raw, -100.0)          # torch BCE clamp
        log_1mp = jnp.maximum(log_p_raw - x, -100.0)    # log(1 - sigmoid(x)), clamped
        # Equals t*log_p + (1-t)*log_1mp with fewer VALU ops; negated once in wrapper.
        bce_neg = log_1mp + t * (log_p - log_1mp)

        g = chunk_rows // 8

        def red(v):
            # (chunk, 128) -> (g, 8, 128) -> sum over g: pure vreg-wise VPU adds.
            return v.reshape(g, 8, LANE).sum(axis=0)

        out_ref[0] += red(p * t)     # intersection
        out_ref[1] += red(p)         # sum sigmoid(inputs)
        out_ref[2] += red(t)         # sum targets
        out_ref[3] += red(bce_neg)   # -(BCE sum)
        return carry

    jax.lax.fori_loop(0, block_rows // chunk_rows, body, 0)


@jax.jit
def dice_bce_loss(inputs, targets, smooth=1.0):
    x = inputs.reshape(-1)
    t = targets.reshape(-1)
    n = x.shape[0]

    # Lane tail: only when n is not a multiple of 128 do we materialize a (small)
    # pad to the next lane multiple; the common case is a free reshape, zero copies.
    n128 = _round_up(n, LANE)
    if n128 != n:
        x = jnp.pad(x, (0, n128 - n), constant_values=PAD_LOGIT)
        t = jnp.pad(t, (0, n128 - n))
    rows = n128 // LANE

    per_core = pl.cdiv(rows, NCORES)
    block_rows = min(MAX_BLOCK_ROWS, _round_up(per_core, 8))
    chunk_rows = min(CHUNK_ROWS, block_rows)
    block_rows = _round_up(block_rows, chunk_rows)       # whole number of chunks
    steps = pl.cdiv(per_core, block_rows)
    last_block = (rows - 1) // block_rows                # DMA clamp target (static)

    x2 = x.reshape(rows, LANE)
    t2 = t.reshape(rows, LANE)

    kernel = functools.partial(
        _dice_bce_kernel, rows=rows, steps=steps,
        block_rows=block_rows, chunk_rows=chunk_rows)

    in_spec = pl.BlockSpec(
        (block_rows, LANE),
        lambda c, s, steps=steps, last=last_block: (
            jnp.minimum(c * steps + s, last), 0))
    out_spec = pl.BlockSpec((None, 4, 8, LANE), lambda c, s: (c, 0, 0, 0))

    # TODO(synk): on v7x, "parallel" may need pltpu.CORE_PARALLEL to guarantee the
    # leading axis shards across both TensorCores; kept portable here.
    partials = pl.pallas_call(
        kernel,
        out_shape=jax.ShapeDtypeStruct((NCORES, 4, 8, LANE), jnp.float32),
        grid=(NCORES, steps),
        in_specs=[in_spec, in_spec],
        out_specs=out_spec,
        compiler_params=pltpu.CompilerParams(
            dimension_semantics=("parallel", "arbitrary"),
            vmem_limit_bytes=48 * 1024 * 1024,
        ),
    )(x2, t2)

    # One cheap cross-lane reduction + scalar epilogue outside the kernel.
    sums = jnp.sum(partials, axis=(0, 2, 3))             # (4,)
    inter, p_sum, t_sum, bce_neg_sum = sums[0], sums[1], sums[2], sums[3]
    smooth = jnp.float32(smooth)
    dice_loss = 1.0 - (2.0 * inter + smooth) / (p_sum + t_sum + smooth)
    bce_mean = -bce_neg_sum / jnp.float32(n)
    return bce_mean + dice_loss


def _reference(inputs, targets, smooth=1.0):
    # Mirrors the PyTorch module: sigmoid, then dice + clamped BCE (mean).
    p = jax.nn.sigmoid(inputs.astype(jnp.float32)).reshape(-1)
    t = targets.astype(jnp.float32).reshape(-1)
    inter = jnp.sum(p * t)
    dice = 1.0 - (2.0 * inter + smooth) / (jnp.sum(p) + jnp.sum(t) + smooth)
    log_p = jnp.maximum(jnp.log(p), -100.0)
    log_1mp = jnp.maximum(jnp.log(1.0 - p), -100.0)
    bce = jnp.mean(-(t * log_p + (1.0 - t) * log_1mp))
    return bce + dice


if __name__ == "__main__":
    key = jax.random.PRNGKey(0)
    k1, k2 = jax.random.split(key)
    # NCHW logits and binary targets, as the PyTorch module expects.
    x = jax.random.normal(k1, (2, 4, 16, 16), dtype=jnp.float32)
    tgt = (jax.random.uniform(k2, (2, 4, 16, 16)) > 0.5).astype(jnp.float32)

    loss = dice_bce_loss(x, tgt, smooth=1.0)
    loss = jax.block_until_ready(loss)

    ref = _reference(x, tgt, smooth=1.0)
    assert jnp.allclose(loss, ref, rtol=1e-5, atol=1e-5), (loss, ref)
    print("KERNEL_OK")
</pallas_src>

<mosaic_0001>
module attributes {stable_mosaic.version = 11 : i64} {
  func.func @_dice_bce_kernel(%arg0: i32, %arg1: i32, %arg2: memref<8x128xf32, #tpu.memory_space<vmem>>, %arg3: memref<8x128xf32, #tpu.memory_space<vmem>>, %arg4: memref<1x4x8x128xf32, #tpu.memory_space<vmem>>) attributes {dimension_semantics = [#tpu.dimension_semantics<parallel>, #tpu.dimension_semantics<arbitrary>], iteration_bounds = array<i64: 2, 1>, scalar_prefetch = 0 : i64, scratch_operands = 0 : i64, tpu.core_type = #tpu.core_type<tc>, window_params = [{transform_indices = @transform_0, window_bounds = array<i64: 8, 128>}, {transform_indices = @transform_1, window_bounds = array<i64: 8, 128>}, {transform_indices = @transform_2, window_bounds = array<i64: 1, 4, 8, 128>}]} {
    %c0_i32 = arith.constant 0 : i32
    %0 = arith.cmpi eq, %arg1, %c0_i32 : i32
    %1 = arith.extui %0 : i1 to i32
    %c0_i32_0 = arith.constant 0 : i32
    %2 = arith.cmpi ne, %1, %c0_i32_0 : i32
    scf.if %2 {
      %cst_45 = arith.constant 0.000000e+00 : f32
      %80 = vector.broadcast %cst_45 : f32 to vector<4x8x128xf32>
      %c0_46 = arith.constant 0 : index
      %c0_47 = arith.constant 0 : index
      %c0_48 = arith.constant 0 : index
      %c0_49 = arith.constant 0 : index
      %81 = vector.load %arg4[%c0_46, %c0_47, %c0_48, %c0_49] : memref<1x4x8x128xf32, #tpu.memory_space<vmem>>, vector<1x4x8x128xf32>
      %82 = vector.shape_cast %81 : vector<1x4x8x128xf32> to vector<4x8x128xf32>
      %83 = vector.shape_cast %80 : vector<4x8x128xf32> to vector<1x4x8x128xf32>
      tpu.vector_store %arg4[%c0_46, %c0_47, %c0_48, %c0_49], %83 {strides = array<i32>} : memref<1x4x8x128xf32, #tpu.memory_space<vmem>>, vector<1x4x8x128xf32>,
    } else {
    }
    %c1_i32 = arith.constant 1 : i32
    %3 = arith.muli %arg0, %c1_i32 : i32
    %4 = arith.addi %3, %arg1 : i32
    %c8_i32 = arith.constant 8 : i32
    %5 = arith.muli %4, %c8_i32 : i32
    %c0_i32_1 = arith.constant 0 : i32
    %c8_i32_2 = arith.constant 8 : i32
    %6 = arith.muli %c0_i32_1, %c8_i32_2 : i32
    %7 = tpu.assume_multiple %6, 8 : i32
    %8 = arith.index_cast %7 : i32 to index
    %c0 = arith.constant 0 : index
    %9 = vector.load %arg2[%8, %c0] : memref<8x128xf32, #tpu.memory_space<vmem>>, vector<8x128xf32>
    %10 = arith.index_cast %7 : i32 to index
    %c0_3 = arith.constant 0 : index
    %11 = vector.load %arg3[%10, %c0_3] : memref<8x128xf32, #tpu.memory_space<vmem>>, vector<8x128xf32>
    %12 = arith.addi %5, %7 : i32
    %13 = tpu.iota {dimensions = array<i32: 0>} : vector<8x1xi32>
    %14 = vector.broadcast %12 : i32 to vector<8x1xi32>
    %15 = arith.addi %14, %13 : vector<8x1xi32>
    %c16_i32 = arith.constant 16 : i32
    %16 = vector.broadcast %c16_i32 : i32 to vector<8x1xi32>
    %17 = arith.cmpi slt, %15, %16 : vector<8x1xi32>
    %cst = arith.constant -1.000000e+04 : f32
    %18 = vector.shape_cast %17 : vector<8x1xi1> to vector<8x1xi1>
    %19 = vector.broadcast %18 : vector<8x1xi1> to vector<8x128xi1>
    %20 = vector.broadcast %cst : f32 to vector<8x128xf32>
    %21 = arith.select %19, %9, %20 : vector<8x128xi1>, vector<8x128xf32>
    %cst_4 = arith.constant 0.000000e+00 : f32
    %22 = vector.shape_cast %17 : vector<8x1xi1> to vector<8x1xi1>
    %23 = vector.broadcast %22 : vector<8x1xi1> to vector<8x128xi1>
    %24 = vector.broadcast %cst_4 : f32 to vector<8x128xf32>
    %25 = arith.select %23, %11, %24 : vector<8x128xi1>, vector<8x128xf32>
    %cst_5 = arith.constant 0.000000e+00 : f32
    %26 = vector.broadcast %cst_5 : f32 to vector<8x128xf32>
    %27 = arith.subf %26, %21 : vector<8x128xf32>
    %cst_6 = arith.constant 0.000000e+00 : f32
    %28 = vector.broadcast %cst_6 : f32 to vector<8x128xf32>
    %29 = arith.maximumf %27, %28 : vector<8x128xf32>
    %30 = math.absf %21 : vector<8x128xf32>
    %cst_7 = arith.constant 0.000000e+00 : f32
    %31 = vector.broadcast %cst_7 : f32 to vector<8x128xf32>
    %32 = arith.subf %31, %30 : vector<8x128xf32>
    %33 = math.exp %32 : vector<8x128xf32>
    %34 = math.log1p %33 : vector<8x128xf32>
    %35 = arith.addf %29, %34 : vector<8x128xf32>
    %cst_8 = arith.constant 0.000000e+00 : f32
    %36 = vector.broadcast %cst_8 : f32 to vector<8x128xf32>
    %37 = arith.subf %36, %35 : vector<8x128xf32>
    %38 = math.exp %37 : vector<8x128xf32>
    %cst_9 = arith.constant -1.000000e+02 : f32
    %39 = vector.broadcast %cst_9 : f32 to vector<8x128xf32>
    %40 = arith.maximumf %37, %39 : vector<8x128xf32>
    %41 = arith.subf %37, %21 : vector<8x128xf32>
    %cst_10 = arith.constant -1.000000e+02 : f32
    %42 = vector.broadcast %cst_10 : f32 to vector<8x128xf32>
    %43 = arith.maximumf %41, %42 : vector<8x128xf32>
    %44 = arith.subf %40, %43 : vector<8x128xf32>
    %45 = arith.mulf %25, %44 : vector<8x128xf32>
    %46 = arith.addf %43, %45 : vector<8x128xf32>
    %c0_11 = arith.constant 0 : index
    %c0_12 = arith.constant 0 : index
    %c0_13 = arith.constant 0 : index
    %c0_14 = arith.constant 0 : index
    %47 = vector.load %arg4[%c0_11, %c0_12, %c0_13, %c0_14] : memref<1x4x8x128xf32, #tpu.memory_space<vmem>>, vector<1x1x8x128xf32>
    %48 = vector.shape_cast %47 : vector<1x1x8x128xf32> to vector<8x128xf32>
    %49 = arith.mulf %38, %25 : vector<8x128xf32>
    %50 = vector.shape_cast %49 : vector<8x128xf32> to vector<1x8x128xf32>
    %cst_15 = arith.constant dense<0.000000e+00> : vector<8x128xf32>
    %51 = vector.multi_reduction <add>, %50, %cst_15 [0] : vector<1x8x128xf32> to vector<8x128xf32>
    %52 = arith.addf %48, %51 : vector<8x128xf32>
    %c0_16 = arith.constant 0 : index
    %c0_17 = arith.constant 0 : index
    %c0_18 = arith.constant 0 : index
    %c0_19 = arith.constant 0 : index
    %53 = vector.load %arg4[%c0_16, %c0_17, %c0_18, %c0_19] : memref<1x4x8x128xf32, #tpu.memory_space<vmem>>, vector<1x1x8x128xf32>
    %54 = vector.shape_cast %53 : vector<1x1x8x128xf32> to vector<8x128xf32>
    %55 = vector.shape_cast %52 : vector<8x128xf32> to vector<1x1x8x128xf32>
    tpu.vector_store %arg4[%c0_16, %c0_17, %c0_18, %c0_19], %55 {strides = array<i32>} : memref<1x4x8x128xf32, #tpu.memory_space<vmem>>, vector<1x1x8x128xf32>,
    %c0_20 = arith.constant 0 : index
    %c1 = arith.constant 1 : index
    %c0_21 = arith.constant 0 : index
    %c0_22 = arith.constant 0 : index
    %56 = vector.load %arg4[%c0_20, %c1, %c0_21, %c0_22] : memref<1x4x8x128xf32, #tpu.memory_space<vmem>>, vector<1x1x8x128xf32>
    %57 = vector.shape_cast %56 : vector<1x1x8x128xf32> to vector<8x128xf32>
    %58 = vector.shape_cast %38 : vector<8x128xf32> to vector<1x8x128xf32>
    %cst_23 = arith.constant dense<0.000000e+00> : vector<8x128xf32>
    %59 = vector.multi_reduction <add>, %58, %cst_23 [0] : vector<1x8x128xf32> to vector<8x128xf32>
    %60 = arith.addf %57, %59 : vector<8x128xf32>
    %c0_24 = arith.constant 0 : index
    %c1_25 = arith.constant 1 : index
    %c0_26 = arith.constant 0 : index
    %c0_27 = arith.constant 0 : index
    %61 = vector.load %arg4[%c0_24, %c1_25, %c0_26, %c0_27] : memref<1x4x8x128xf32, #tpu.memory_space<vmem>>, vector<1x1x8x128xf32>
    %62 = vector.shape_cast %61 : vector<1x1x8x128xf32> to vector<8x128xf32>
    %63 = vector.shape_cast %60 : vector<8x128xf32> to vector<1x1x8x128xf32>
    tpu.vector_store %arg4[%c0_24, %c1_25, %c0_26, %c0_27], %63 {strides = array<i32>} : memref<1x4x8x128xf32, #tpu.memory_space<vmem>>, vector<1x1x8x128xf32>,
    %c0_28 = arith.constant 0 : index
    %c2 = arith.constant 2 : index
    %c0_29 = arith.constant 0 : index
    %c0_30 = arith.constant 0 : index
    %64 = vector.load %arg4[%c0_28, %c2, %c0_29, %c0_30] : memref<1x4x8x128xf32, #tpu.memory_space<vmem>>, vector<1x1x8x128xf32>
    %65 = vector.shape_cast %64 : vector<1x1x8x128xf32> to vector<8x128xf32>
    %66 = vector.shape_cast %25 : vector<8x128xf32> to vector<1x8x128xf32>
    %cst_31 = arith.constant dense<0.000000e+00> : vector<8x128xf32>
    %67 = vector.multi_reduction <add>, %66, %cst_31 [0] : vector<1x8x128xf32> to vector<8x128xf32>
    %68 = arith.addf %65, %67 : vector<8x128xf32>
    %c0_32 = arith.constant 0 : index
    %c2_33 = arith.constant 2 : index
    %c0_34 = arith.constant 0 : index
    %c0_35 = arith.constant 0 : index
    %69 = vector.load %arg4[%c0_32, %c2_33, %c0_34, %c0_35] : memref<1x4x8x128xf32, #tpu.memory_space<vmem>>, vector<1x1x8x128xf32>
    %70 = vector.shape_cast %69 : vector<1x1x8x128xf32> to vector<8x128xf32>
    %71 = vector.shape_cast %68 : vector<8x128xf32> to vector<1x1x8x128xf32>
    tpu.vector_store %arg4[%c0_32, %c2_33, %c0_34, %c0_35], %71 {strides = array<i32>} : memref<1x4x8x128xf32, #tpu.memory_space<vmem>>, vector<1x1x8x128xf32>,
    %c0_36 = arith.constant 0 : index
    %c3 = arith.constant 3 : index
    %c0_37 = arith.constant 0 : index
    %c0_38 = arith.constant 0 : index
    %72 = vector.load %arg4[%c0_36, %c3, %c0_37, %c0_38] : memref<1x4x8x128xf32, #tpu.memory_space<vmem>>, vector<1x1x8x128xf32>
    %73 = vector.shape_cast %72 : vector<1x1x8x128xf32> to vector<8x128xf32>
    %74 = vector.shape_cast %46 : vector<8x128xf32> to vector<1x8x128xf32>
    %cst_39 = arith.constant dense<0.000000e+00> : vector<8x128xf32>
    %75 = vector.multi_reduction <add>, %74, %cst_39 [0] : vector<1x8x128xf32> to vector<8x128xf32>
    %76 = arith.addf %73, %75 : vector<8x128xf32>
    %c0_40 = arith.constant 0 : index
    %c3_41 = arith.constant 3 : index
    %c0_42 = arith.constant 0 : index
    %c0_43 = arith.constant 0 : index
    %77 = vector.load %arg4[%c0_40, %c3_41, %c0_42, %c0_43] : memref<1x4x8x128xf32, #tpu.memory_space<vmem>>, vector<1x1x8x128xf32>
    %78 = vector.shape_cast %77 : vector<1x1x8x128xf32> to vector<8x128xf32>
    %79 = vector.shape_cast %76 : vector<8x128xf32> to vector<1x1x8x128xf32>
    tpu.vector_store %arg4[%c0_40, %c3_41, %c0_42, %c0_43], %79 {strides = array<i32>} : memref<1x4x8x128xf32, #tpu.memory_space<vmem>>, vector<1x1x8x128xf32>,
    %c1_i32_44 = arith.constant 1 : i32
    return
  }
  func.func @transform_0(%arg0: i32, %arg1: i32) -> (i32, i32) {
    %c1_i32 = arith.constant 1 : i32
    %0 = arith.muli %arg0, %c1_i32 : i32
    %1 = arith.addi %0, %arg1 : i32
    %c1_i32_0 = arith.constant 1 : i32
    %2 = arith.minsi %1, %c1_i32_0 : i32
    %c0_i32 = arith.constant 0 : i32
    %c0_i32_1 = arith.constant 0 : i32
    return %2, %c0_i32 : i32, i32
  }
  func.func @transform_1(%arg0: i32, %arg1: i32) -> (i32, i32) {
    %c1_i32 = arith.constant 1 : i32
    %0 = arith.muli %arg0, %c1_i32 : i32
    %1 = arith.addi %0, %arg1 : i32
    %c1_i32_0 = arith.constant 1 : i32
    %2 = arith.minsi %1, %c1_i32_0 : i32
    %c0_i32 = arith.constant 0 : i32
    %c0_i32_1 = arith.constant 0 : i32
    return %2, %c0_i32 : i32, i32
  }
  func.func @transform_2(%arg0: i32, %arg1: i32) -> (i32, i32, i32, i32) {
    %c0_i32 = arith.constant 0 : i32
    %c0_i32_0 = arith.constant 0 : i32
    %c0_i32_1 = arith.constant 0 : i32
    %c0_i32_2 = arith.constant 0 : i32
    return %arg0, %c0_i32, %c0_i32_0, %c0_i32_1 : i32, i32, i32, i32
  }
}

</mosaic_0001>

<bundles_post_ra>
// kernel: dice_bce_loss.1
= control target key start
LH: loop header
LB: loop body
LE: loop exit
PB: predicated region body
PF: predicated region fallthrough
CT: control target
= control target key end

     0   :  { %s449_s9 = smov 0   ;;  %s451_s10 = smov 0   ;;  %s485_s0 = inlined_call_operand.vmem [shape: f32[16,128], index: 0, kind: input, shape index: {}]   ;;  %s486_s1 = inlined_call_operand.vmem [shape: f32[16,128], index: 1, kind: input, shape index: {}]   ;;  %s487_s2 = inlined_call_operand.vmem [shape: f32[2,4,8,128], index: 2, kind: output, shape index: {}]  }
   0x1   :  { %s453_s11 = smov 0  }
   0x2 LB: > { %s24_s12 = sadd.s32 1, %s428_s10  ;;  %p358_p0 = scmp.ge.s32.totalorder %s432_s11, 1  ;;  %s432_s11 = sphi %s453_s11, %s12_s11   ;;  %s428_s10 = sphi %s451_s10, %s489_s10   ;;  %s424_s9 = sphi %s449_s9, %s488_s9  }
   0x3   : > { %p26_p1 = scmp.ge.s32.totalorder %s24_s12, 2  ;;  %p156_p2 = scmp.lt.s32.totalorder %s432_s11, 3 }
   0x5   : > { %s491_s12 = smov (%p26_p1, %s24_s12), 0  ;;  %p157_p3 = pnand %p358_p0, %p156_p2 }
   0x6   : > { %p188_p4 = scmp.lt.s32.totalorder (!%p157_p3), %s424_s9, 1  ;;  %s369_s13 = sshll.u32 (!%p157_p3), %s424_s9, 3 }
   0x7   : > { %160 = sbr.rel (%p157_p3) target bundleno = 61 (0x3d), region = 28 }
   0xc   : > { %v225_v0 = vlaneseq  ;;  %v227_v1 = vstv %s369_s13  ;;  %s493_s9 = smov (!%p188_p4, %s424_s9), 1 }
   0xd   : > { %s191_s14 = scalar_select %p188_p4, %s493_s9, 1 }
   0xe   : > { %v226_v2 = vshrl.u32 %v225_v0, 7  ;;  %s378_s22 = sshll.u32 %s493_s9, 5 }
   0xf   : > { %s362_s15 = sshll.u32 %s191_s14, 3  ;;  %s211_s25 = scalar_lea.vmem %s487_s2, %s378_s22 }
  0x10   : > { %v228_v3 = vadd.s32 %v227_v1, %v226_v2  ;;  %s193_s18 = scalar_lea.vmem %s485_s0, %s362_s15  ;;  %s203_s21 = scalar_lea.vmem %s486_s1, %s362_s15 }
  0x11   : > { %v222_v4 = vld [vmem:[%s193_s18] sm:$0xff] }
  0x12   : > { %vm229_vm0 = vcmp.lt.s32.totalorder %v228_v3, 16  ;;  %v223_v8 = vld [vmem:[%s203_s21] sm:$0xff] }
  0x13   : > { %v232_v5 = vsel %vm229_vm0, %v222_v4, -10000.0  ;;  %v233_v10 = vsel %vm229_vm0, %v223_v8, 0.0 }
  0x14   : > { %v236_v6 = vand.u32 2147483647, %v232_v5  ;;  %373 = vst [vmem:[%s211_s25 + $0x10] sm:$0xff] %v233_v10  ;;  %v234_v15 = vsub.f32 0.0, %v232_v5 }
  0x16   : > { %v237_v7 = vsub.f32 0.0, %v236_v6  ;;  %v235_v19 = vmax.f32 %v234_v15, 0.0 }
  0x18   : > { %v238_v9 = vmul.f32 1.442695, %v237_v7 }
  0x1a   : > { %404 = vpow2.f32 %v238_v9 }
  0x20   : > { %v405_v11 = vpop.eup %404 }
  0x21   : > { %v240_v12 = vadd.f32 1.0, %v405_v11  ;;  %v243_v13 = vmul.f32 -0.5, %v405_v11  ;;  %v246_v16 = vand.u32 2147483647, %v405_v11 }
  0x23   : > { %406 = vlog2.f32 %v240_v12  ;;  %v244_v14 = vadd.f32 1.0, %v243_v13  ;;  %vm247_vm1 = vcmp.lt.f32.partialorder %v246_v16, 0.0004427343 }
  0x25   : > { %v245_v17 = vmul.f32 %v405_v11, %v244_v14 }
  0x29   : > { %v407_v18 = vpop.eup %406 }
  0x2a   : > { %v242_v20 = vmul.f32 0.6931472, %v407_v18 }
  0x2c   : > { %v248_v21 = vsel %vm247_vm1, %v245_v17, %v242_v20 }
  0x2d   : > { %v249_v22 = vadd.f32 %v248_v21, %v235_v19 }
  0x2f   : > { %v250_v23 = vsub.f32 0.0, %v249_v22 }
  0x31   : > { %v251_v24 = vmul.f32 1.442695, %v250_v23  ;;  %v253_v25 = vmax.f32 %v250_v23, -100.0  ;;  %v254_v26 = vsub.f32 %v250_v23, %v232_v5 }
  0x33   : > { %408 = vpow2.f32 %v251_v24  ;;  %v255_v27 = vmax.f32 %v254_v26, -100.0 }
  0x35   : > { %v256_v28 = vsub.f32 %v253_v25, %v255_v27 }
  0x37   : > { %v257_v29 = vmul.f32 %v256_v28, %v233_v10 }
  0x39   : > { %v409_v30 = vpop.eup %408  ;;  %v258_v31 = vadd.f32 %v257_v29, %v255_v27 }
  0x3a   : > { %v260_v32 = vmul.f32 %v409_v30, %v233_v10  ;;  %371 = vst [vmem:[%s211_s25 + $0x8] sm:$0xff] %v409_v30 }
  0x3b   : > { %375 = vst [vmem:[%s211_s25 + $0x18] sm:$0xff] %v258_v31 }
  0x3c   : > { %263 = vst [vmem:[%s211_s25] sm:$0xff] %v260_v32 }
  0x3d PF: > { %s12_s11 = sadd.s32 1, %s432_s11   ;;  %s488_s9 = smov %s428_s10 }
  0x3e   : > { %p9_p5 = scmp.ge.s32.totalorder %s12_s11, 4   ;;  %s489_s10 = smov %s491_s12 }
  0x40   :  { %11 = sbr.rel (!%p9_p5) target bundleno = 2 (0x2), region = 68 }

</bundles_post_ra>
